<compile_context>
chip_gen: v7x
topology: tpu7x:2x2x1
jax: 0.10.0
libtpu: 0.0.40
codegen_flags: <defaults>
</compile_context>

<pallas_src>
import functools

import jax
import jax.numpy as jnp
import numpy as np
from jax.experimental import pallas as pl
from jax.experimental.pallas import tpu as pltpu


# --------------------------------------------------------------------------- #
# Shared step math
# --------------------------------------------------------------------------- #
def _step_math(x, hp, cp, cg, dhp, dcp,
               wfull, poT, bias, bpo, input_channels, hidden, mm_dtype):
    """One ContPeepholeLSTM ODE step.  dhp/dcp == None encodes the t == 0 branch.

    Returns the lane-dense slab [dh_dt | dc_dt | h_t | c_t] of shape (B, 4*Ch).
    """
    f32 = jnp.float32
    Ci = input_channels
    Ch = hidden
    B = x.shape[0]
    dot = lambda a, b: jnp.dot(a.astype(mm_dtype), b.astype(mm_dtype),
                               preferred_element_type=f32)

    x = x.astype(f32)
    hp = hp.astype(f32)
    cp = cp.astype(f32)
    cg = cg.astype(f32)

    # ---- single fused MXU call: rows [x|h_p|c_p] (gates) and [cg|dh_p|dh_p]
    # (derivatives) against [W^T ; U^T ; P_if^T zero-padded]  (biases folded).
    top = jnp.concatenate([x, hp, cp], axis=1)                    # (B, Ci+2Ch)
    if dhp is None:
        gpre = dot(top, wfull) + bias                             # (B, 4Ch)
        dpre = dot(cg, wfull[:Ci, :])                             # dh_past = 0
    else:
        dhp = dhp.astype(f32)
        bot = jnp.concatenate([cg, dhp, dhp], axis=1)             # (B, Ci+2Ch)
        pre = dot(jnp.concatenate([top, bot], axis=0), wfull)     # (2B, 4Ch)
        gpre = pre[:B] + bias
        dpre = pre[B:]

    # Gates (i and f share one fused sigmoid over 2*Ch lanes).
    i_f = jax.nn.sigmoid(gpre[:, :2 * Ch])
    i_t = i_f[:, :Ch]
    f_t = i_f[:, Ch:]
    c_tilde = jnp.tanh(gpre[:, 2 * Ch:3 * Ch])
    c_t = f_t * cp + i_t * c_tilde

    # Gate-derivative pre-activations (biases drop out of d/dt).
    dA = dpre[:, :Ch]
    dB = dpre[:, Ch:2 * Ch]
    dD = dpre[:, 2 * Ch:3 * Ch]
    dC_part = dpre[:, 3 * Ch:]

    didt = i_t * (1.0 - i_t) * dA
    dfdt = f_t * (1.0 - f_t) * dB
    dc_tilde_dt = (1.0 - c_tilde * c_tilde) * dD
    dc_dt = dfdt * cp + didt * c_tilde + i_t * dc_tilde_dt
    if dcp is not None:
        dc_dt = dc_dt + f_t * dcp.astype(f32)

    # ---- output-gate peephole: two dots against the shared P_o^T (no concat).
    cPo = dot(c_t, poT)
    dcPo = dot(dc_dt, poT)

    o_t = jax.nn.sigmoid(gpre[:, 3 * Ch:] + cPo + bpo)
    dodt = o_t * (1.0 - o_t) * (dC_part + dcPo)
    tanh_c = jnp.tanh(c_t)
    dh_dt = dodt * tanh_c + o_t * (1.0 - tanh_c * tanh_c) * dc_dt
    h_t = o_t * tanh_c

    # Lane-dense slab -> one unmasked full-width store by the caller.
    return jnp.concatenate([dh_dt, dc_dt, h_t, c_t], axis=1)


# --------------------------------------------------------------------------- #
# Kernels
# --------------------------------------------------------------------------- #
def _plstm_step_kernel_t0(x_ref, hp_ref, cp_ref, cg_ref,
                          wfull_ref, po_ref, bias_ref, bpo_ref, out_ref,
                          *, input_channels, hidden, mm_dtype):
    slab = _step_math(x_ref[...], hp_ref[...], cp_ref[...], cg_ref[...],
                      None, None,
                      wfull_ref[...], po_ref[...], bias_ref[...], bpo_ref[...],
                      input_channels, hidden, mm_dtype)
    out_ref[...] = slab.astype(out_ref.dtype)


def _plstm_step_kernel(x_ref, hp_ref, cp_ref, cg_ref, dhp_ref, dcp_ref,
                       wfull_ref, po_ref, bias_ref, bpo_ref, out_ref,
                       *, input_channels, hidden, mm_dtype):
    slab = _step_math(x_ref[...], hp_ref[...], cp_ref[...], cg_ref[...],
                      dhp_ref[...], dcp_ref[...],
                      wfull_ref[...], po_ref[...], bias_ref[...], bpo_ref[...],
                      input_channels, hidden, mm_dtype)
    out_ref[...] = slab.astype(out_ref.dtype)


def _plstm_scan_kernel(x_ref, cg_ref, h0_ref, c0_ref,
                       wfull_ref, po_ref, bias_ref, bpo_ref,
                       out_ref, state_ref,
                       *, input_channels, hidden, mm_dtype):
    """grid=(T,): one delay-LSTM step per grid point, state carried in VMEM."""
    Ch = hidden

    @pl.when(pl.program_id(0) == 0)
    def _():
        h0 = h0_ref[...].astype(jnp.float32)
        c0 = c0_ref[...].astype(jnp.float32)
        z = jnp.zeros_like(h0)
        # state slab layout matches the output slab: [dh | dc | h | c].
        state_ref[...] = jnp.concatenate([z, z, h0, c0], axis=1)

    st = state_ref[...]
    dhp = st[:, 0 * Ch:1 * Ch]
    dcp = st[:, 1 * Ch:2 * Ch]
    hp = st[:, 2 * Ch:3 * Ch]
    cp = st[:, 3 * Ch:4 * Ch]

    slab = _step_math(x_ref[0], hp, cp, cg_ref[0], dhp, dcp,
                      wfull_ref[...], po_ref[...], bias_ref[...], bpo_ref[...],
                      input_channels, Ch, mm_dtype)
    state_ref[...] = slab          # becomes the delayed past state for step t+1
    out_ref[0] = slab.astype(out_ref.dtype)


# --------------------------------------------------------------------------- #
# Parameter prep (hoisted out of the per-step path)
# --------------------------------------------------------------------------- #
def prepare_params(params, matmul_dtype=jnp.bfloat16):
    """Transpose / concatenate / zero-pad weights ONCE.

    Builds a single (Ci+2*Ch, 4*Ch) matmul slab [W^T ; U^T ; P_if^T padded],
    one fused (1, 4*Ch) gate bias, and P_o^T for the output-gate peephole.
    `matmul_dtype=bfloat16` gives single-pass MXU; accumulation stays f32.
    """
    Ch = params["U_i_w"].shape[0]
    Ci = params["W_i_w"].shape[1]
    f32 = jnp.float32

    wblk = jnp.concatenate([params["W_i_w"].T, params["W_f_w"].T,
                            params["W_c_w"].T, params["W_o_w"].T], axis=1)   # (Ci, 4Ch)
    ublk = jnp.concatenate([params["U_i_w"].T, params["U_f_w"].T,
                            params["U_c_w"].T, params["U_o_w"].T], axis=1)   # (Ch, 4Ch)
    zero = jnp.zeros((Ch, Ch), f32)
    pblk = jnp.concatenate([params["P_i_w"].T, params["P_f_w"].T,
                            zero, zero], axis=1)                             # (Ch, 4Ch)
    wfull = jnp.concatenate([wblk, ublk, pblk], axis=0).astype(matmul_dtype)  # (Ci+2Ch, 4Ch)
    poT = params["P_o_w"].T.astype(matmul_dtype)                             # (Ch, Ch)

    bias = jnp.concatenate([
        params["U_i_b"] + params["P_i_b"],
        params["U_f_b"] + params["P_f_b"],
        params["U_c_b"],
        params["U_o_b"],
    ]).reshape(1, 4 * Ch).astype(f32)
    bpo = params["P_o_b"].reshape(1, Ch).astype(f32)

    return dict(wfull=wfull, poT=poT, bias=bias, bpo=bpo,
                hidden=Ch, input_channels=Ci, matmul_dtype=matmul_dtype)


def _cost(B, Ci, Ch, n_steps, bytes_accessed):
    flops = n_steps * (2 * (2 * B) * (Ci + 2 * Ch) * (4 * Ch)
                       + 2 * 2 * B * Ch * Ch + 40 * B * Ch)
    return pl.CostEstimate(flops=int(flops),
                           transcendentals=int(6 * B * Ch * n_steps),
                           bytes_accessed=int(bytes_accessed))


# --------------------------------------------------------------------------- #
# Wrappers
# --------------------------------------------------------------------------- #
def cont_peephole_lstm_func_delay(t, x, h_past, c_past, dhpast_dt, dcpast_dt,
                                  control_gradient, prep):
    """Single-step Pallas forward.  Returns (dh_dt, dc_dt, h_t, c_t).

    At t == 0 the module sets h_past=h, c_past=c, dhpast_dt=dcpast_dt=0: pass
    the initial h/c as h_past/c_past; dhpast_dt/dcpast_dt may be None.
    NOTE: t must be a concrete host scalar (mirrors torch's t.item()).
    """
    B = x.shape[0]
    Ch = prep["hidden"]
    Ci = prep["input_channels"]
    is_t0 = float(t) == 0.0

    vmem = pl.BlockSpec(memory_space=pltpu.MemorySpace.VMEM)
    weights = (prep["wfull"], prep["poT"], prep["bias"], prep["bpo"])
    common = dict(input_channels=Ci, hidden=Ch, mm_dtype=prep["matmul_dtype"])

    if is_t0:
        kernel = functools.partial(_plstm_step_kernel_t0, **common)
        args = (x, h_past, c_past, control_gradient) + weights
    else:
        kernel = functools.partial(_plstm_step_kernel, **common)
        args = (x, h_past, c_past, control_gradient, dhpast_dt, dcpast_dt) + weights

    bytes_accessed = (sum(int(a.size) * a.dtype.itemsize for a in args)
                      + B * 4 * Ch * 4)
    out = pl.pallas_call(
        kernel,
        out_shape=jax.ShapeDtypeStruct((B, 4 * Ch), jnp.float32),
        in_specs=[vmem] * len(args),
        out_specs=vmem,
        cost_estimate=_cost(B, Ci, Ch, 1, bytes_accessed),
    )(*args)

    dh_dt = out[:, 0 * Ch:1 * Ch]
    dc_dt = out[:, 1 * Ch:2 * Ch]
    h_t = out[:, 2 * Ch:3 * Ch]
    c_t = out[:, 3 * Ch:4 * Ch]
    return dh_dt, dc_dt, h_t, c_t


def cont_peephole_lstm_scan(x_seq, cg_seq, h0, c0, prep):
    """T consecutive delay-LSTM ODE steps in ONE pallas_call (grid=(T,)).

    Weights / biases / initial state use constant-index_map BlockSpecs so they
    are DMA'd into VMEM once and stay resident for the whole trajectory; the
    recurrent state is carried in a VMEM scratch slab.  Step s uses step s-1's
    outputs as the delayed past state (step 0 uses h0/c0 and zero derivatives),
    matching the module's sequential memory_storage pop/push behaviour.
    Returns (dh_dt, dc_dt, h_t, c_t), each of shape (T, B, Ch).
    """
    T, B, Ci = x_seq.shape
    Ch = prep["hidden"]

    kernel = functools.partial(_plstm_scan_kernel, input_channels=Ci, hidden=Ch,
                               mm_dtype=prep["matmul_dtype"])

    def const_spec(arr):                     # full array, constant block -> resident
        return pl.BlockSpec(arr.shape, lambda t: (0, 0))

    step_in = pl.BlockSpec((1, B, Ci), lambda t: (t, 0, 0))

    grid_spec = pltpu.PrefetchScalarGridSpec(
        num_scalar_prefetch=0,
        grid=(T,),
        in_specs=[
            step_in, step_in,                              # x_seq, cg_seq
            const_spec(h0), const_spec(c0),                # initial state
            const_spec(prep["wfull"]), const_spec(prep["poT"]),
            const_spec(prep["bias"]), const_spec(prep["bpo"]),
        ],
        out_specs=pl.BlockSpec((1, B, 4 * Ch), lambda t: (t, 0, 0)),
        scratch_shapes=[pltpu.VMEM((B, 4 * Ch), jnp.float32)],   # carried state
    )

    inputs = (x_seq, cg_seq, h0, c0,
              prep["wfull"], prep["poT"], prep["bias"], prep["bpo"])
    bytes_accessed = (sum(int(a.size) * a.dtype.itemsize for a in inputs)
                      + T * B * 4 * Ch * 4)

    out = pl.pallas_call(
        kernel,
        out_shape=jax.ShapeDtypeStruct((T, B, 4 * Ch), jnp.float32),
        grid_spec=grid_spec,
        compiler_params=pltpu.CompilerParams(dimension_semantics=("arbitrary",)),
        cost_estimate=_cost(B, Ci, Ch, T, bytes_accessed),
    )(*inputs)

    dh = out[:, :, 0 * Ch:1 * Ch]
    dc = out[:, :, 1 * Ch:2 * Ch]
    h = out[:, :, 2 * Ch:3 * Ch]
    c = out[:, :, 3 * Ch:4 * Ch]
    return dh, dc, h, c


# --------------------------------------------------------------------------- #
# Pure-JAX references (mirror the torch forward with per-gate Linears)
# --------------------------------------------------------------------------- #
def _reference(x, h_past, c_past, dhpast, dcpast, cg, p):
    sig = jax.nn.sigmoid
    i_t = sig(x @ p["W_i_w"].T + h_past @ p["U_i_w"].T + p["U_i_b"]
              + c_past @ p["P_i_w"].T + p["P_i_b"])
    f_t = sig(x @ p["W_f_w"].T + h_past @ p["U_f_w"].T + p["U_f_b"]
              + c_past @ p["P_f_w"].T + p["P_f_b"])
    c_tilde = jnp.tanh(x @ p["W_c_w"].T + h_past @ p["U_c_w"].T + p["U_c_b"])
    c_t = f_t * c_past + i_t * c_tilde
    o_t = sig(x @ p["W_o_w"].T + h_past @ p["U_o_w"].T + p["U_o_b"]
              + c_t @ p["P_o_w"].T + p["P_o_b"])
    h_t = o_t * jnp.tanh(c_t)
    dA = cg @ p["W_i_w"].T + dhpast @ p["U_i_w"].T + dhpast @ p["P_i_w"].T
    didt = i_t * (1 - i_t) * dA
    dB = cg @ p["W_f_w"].T + dhpast @ p["U_f_w"].T + dhpast @ p["P_f_w"].T
    dfdt = f_t * (1 - f_t) * dB
    dD = cg @ p["W_c_w"].T + dhpast @ p["U_c_w"].T
    dc_tilde_dt = (1 - c_tilde ** 2) * dD
    dc_dt = dfdt * c_past + f_t * dcpast + didt * c_tilde + i_t * dc_tilde_dt
    dC = cg @ p["W_o_w"].T + dhpast @ p["U_o_w"].T + dc_dt @ p["P_o_w"].T
    dodt = o_t * (1 - o_t) * dC
    d_tanh_c = (1 - jnp.tanh(c_t) ** 2) * dc_dt
    dh_dt = dodt * jnp.tanh(c_t) + o_t * d_tanh_c
    return dh_dt, dc_dt, h_t, c_t


def _reference_scan(x_seq, cg_seq, h0, c0, p):
    h, c = h0, c0
    dh = jnp.zeros_like(h0)
    dc = jnp.zeros_like(c0)
    dhs, dcs, hs, cs = [], [], [], []
    for s in range(x_seq.shape[0]):
        dh, dc, h, c = _reference(x_seq[s], h, c, dh, dc, cg_seq[s], p)
        dhs.append(dh); dcs.append(dc); hs.append(h); cs.append(c)
    st = lambda xs: jnp.stack(xs, axis=0)
    return st(dhs), st(dcs), st(hs), st(cs)


def _init_params(key, input_channels, hidden_channels):
    ks = jax.random.split(key, 18)
    bi = 1.0 / np.sqrt(input_channels)
    bh = 1.0 / np.sqrt(hidden_channels)
    u = lambda k, shape, b: jax.random.uniform(k, shape, jnp.float32, -b, b)
    p = {}
    for i, g in enumerate(["i", "f", "o", "c"]):
        p[f"W_{g}_w"] = u(ks[i], (hidden_channels, input_channels), bi)
    for i, g in enumerate(["i", "f", "o", "c"]):
        p[f"U_{g}_w"] = u(ks[4 + 2 * i], (hidden_channels, hidden_channels), bh)
        p[f"U_{g}_b"] = u(ks[5 + 2 * i], (hidden_channels,), bh)
    for i, g in enumerate(["i", "f", "o"]):
        p[f"P_{g}_w"] = u(ks[12 + 2 * i], (hidden_channels, hidden_channels), bh)
        p[f"P_{g}_b"] = u(ks[13 + 2 * i], (hidden_channels,), bh)
    return p


if __name__ == "__main__":
    B, Ci, Ch, T = 8, 16, 32, 6          # 4*Ch = 128 -> lane-dense output slab
    key = jax.random.PRNGKey(0)
    kp, kx, kh, kc, kcg, kxs, kcgs = jax.random.split(key, 7)

    params = _init_params(kp, Ci, Ch)
    prep_f32 = prepare_params(params, matmul_dtype=jnp.float32)   # exact-algebra mode
    prep_bf16 = prepare_params(params)                            # bf16 MXU (default)

    x = jax.random.normal(kx, (B, Ci), jnp.float32)
    h = jax.random.normal(kh, (B, Ch), jnp.float32)
    c = jnp.clip(jax.random.normal(kc, (B, Ch), jnp.float32), -1.0, 1.0)
    cg = jax.random.normal(kcg, (B, Ci), jnp.float32)   # dxdt.derivative(t)

    # ---- single-step path (f32 MXU operands): strict algebra check ----------
    dh0, dc0, h1, c1 = cont_peephole_lstm_func_delay(0.0, x, h, c, None, None,
                                                     cg, prep_f32)
    jax.block_until_ready((dh0, dc0, h1, c1))
    z = jnp.zeros_like(h)
    dh0_r, dc0_r, h1_r, c1_r = _reference(x, h, c, z, z, cg, params)
    for a, b in [(dh0, dh0_r), (dc0, dc0_r), (h1, h1_r), (c1, c1_r)]:
        np.testing.assert_allclose(np.asarray(a), np.asarray(b), rtol=1e-4, atol=1e-4)

    dh1, dc1, h2, c2 = cont_peephole_lstm_func_delay(1.0, x, h1, c1, dh0, dc0,
                                                     cg, prep_f32)
    jax.block_until_ready((dh1, dc1, h2, c2))
    dh1_r, dc1_r, h2_r, c2_r = _reference(x, h1_r, c1_r, dh0_r, dc0_r, cg, params)
    for a, b in [(dh1, dh1_r), (dc1, dc1_r), (h2, h2_r), (c2, c2_r)]:
        np.testing.assert_allclose(np.asarray(a), np.asarray(b), rtol=1e-4, atol=1e-4)

    # ---- fused T-step scan: weights VMEM-resident across the trajectory ------
    x_seq = jax.random.normal(kxs, (T, B, Ci), jnp.float32)
    cg_seq = jax.random.normal(kcgs, (T, B, Ci), jnp.float32)
    refs = _reference_scan(x_seq, cg_seq, h, c, params)

    scan_f32 = cont_peephole_lstm_scan(x_seq, cg_seq, h, c, prep_f32)
    jax.block_until_ready(scan_f32)
    for a, b in zip(scan_f32, refs):
        np.testing.assert_allclose(np.asarray(a), np.asarray(b), rtol=1e-4, atol=1e-4)

    # ---- same scan with bf16 MXU operands (perf default; looser tolerance
    # vs the f32 reference, as noted in the review) ----------------------------
    scan_bf16 = cont_peephole_lstm_scan(x_seq, cg_seq, h, c, prep_bf16)
    jax.block_until_ready(scan_bf16)
    for a, b in zip(scan_bf16, refs):
        np.testing.assert_allclose(np.asarray(a), np.asarray(b), rtol=1e-1, atol=1e-1)

    print("KERNEL_OK")
</pallas_src>

<mosaic_0001>
module attributes {stable_mosaic.version = 11 : i64} {
  func.func @_plstm_step_kernel_t0(%arg0: memref<8x16xf32, #tpu.memory_space<vmem>>, %arg1: memref<8x32xf32, #tpu.memory_space<vmem>>, %arg2: memref<8x32xf32, #tpu.memory_space<vmem>>, %arg3: memref<8x16xf32, #tpu.memory_space<vmem>>, %arg4: memref<80x128xf32, #tpu.memory_space<vmem>>, %arg5: memref<32x32xf32, #tpu.memory_space<vmem>>, %arg6: memref<1x128xf32, #tpu.memory_space<vmem>>, %arg7: memref<1x32xf32, #tpu.memory_space<vmem>>, %arg8: memref<8x128xf32, #tpu.memory_space<vmem>>) attributes {dimension_semantics = [], scalar_prefetch = 0 : i64, scratch_operands = 0 : i64, tpu.core_type = #tpu.core_type<tc>} {
    %c0 = arith.constant 0 : index
    %c0_0 = arith.constant 0 : index
    %0 = vector.load %arg0[%c0, %c0_0] : memref<8x16xf32, #tpu.memory_space<vmem>>, vector<8x16xf32>
    %c0_1 = arith.constant 0 : index
    %c0_2 = arith.constant 0 : index
    %1 = vector.load %arg1[%c0_1, %c0_2] : memref<8x32xf32, #tpu.memory_space<vmem>>, vector<8x32xf32>
    %c0_3 = arith.constant 0 : index
    %c0_4 = arith.constant 0 : index
    %2 = vector.load %arg2[%c0_3, %c0_4] : memref<8x32xf32, #tpu.memory_space<vmem>>, vector<8x32xf32>
    %c0_5 = arith.constant 0 : index
    %c0_6 = arith.constant 0 : index
    %3 = vector.load %arg3[%c0_5, %c0_6] : memref<8x16xf32, #tpu.memory_space<vmem>>, vector<8x16xf32>
    %c0_7 = arith.constant 0 : index
    %c0_8 = arith.constant 0 : index
    %4 = vector.load %arg4[%c0_7, %c0_8] : memref<80x128xf32, #tpu.memory_space<vmem>>, vector<80x128xf32>
    %c0_9 = arith.constant 0 : index
    %c0_10 = arith.constant 0 : index
    %5 = vector.load %arg5[%c0_9, %c0_10] : memref<32x32xf32, #tpu.memory_space<vmem>>, vector<32x32xf32>
    %c0_11 = arith.constant 0 : index
    %c0_12 = arith.constant 0 : index
    %6 = vector.load %arg6[%c0_11, %c0_12] : memref<1x128xf32, #tpu.memory_space<vmem>>, vector<1x128xf32>
    %c0_13 = arith.constant 0 : index
    %c0_14 = arith.constant 0 : index
    %7 = vector.load %arg7[%c0_13, %c0_14] : memref<1x32xf32, #tpu.memory_space<vmem>>, vector<1x32xf32>
    %8 = tpu.concatenate %0, %1, %2 in 1 : vector<8x16xf32>, vector<8x32xf32>, vector<8x32xf32> -> vector<8x80xf32>
    %cst = arith.constant dense<0.000000e+00> : vector<8x128xf32>
    %9 = tpu.matmul %8, %4, %cst {dimension_numbers = #tpu.dot_dimension_numbers<[1], [0], [0], [1], [0, 0, 1, 1], [], []>} : vector<8x80xf32>, vector<80x128xf32>, vector<8x128xf32> -> vector<8x128xf32>
    %10 = vector.broadcast %6 : vector<1x128xf32> to vector<8x128xf32>
    %11 = arith.addf %9, %10 : vector<8x128xf32>
    %12 = vector.extract_strided_slice %4 {offsets = [0, 0], sizes = [16, 128], strides = [1, 1]} : vector<80x128xf32> to vector<16x128xf32>
    %cst_15 = arith.constant dense<0.000000e+00> : vector<8x128xf32>
    %13 = tpu.matmul %3, %12, %cst_15 {dimension_numbers = #tpu.dot_dimension_numbers<[1], [0], [0], [1], [0, 0, 1, 1], [], []>} : vector<8x16xf32>, vector<16x128xf32>, vector<8x128xf32> -> vector<8x128xf32>
    %14 = vector.extract_strided_slice %11 {offsets = [0, 0], sizes = [8, 64], strides = [1, 1]} : vector<8x128xf32> to vector<8x64xf32>
    %15 = arith.negf %14 : vector<8x64xf32>
    %16 = math.exp %15 : vector<8x64xf32>
    %cst_16 = arith.constant 1.000000e+00 : f32
    %17 = vector.broadcast %cst_16 : f32 to vector<8x64xf32>
    %18 = arith.addf %17, %16 : vector<8x64xf32>
    %19 = arith.divf %17, %18 : vector<8x64xf32>
    %20 = vector.extract_strided_slice %19 {offsets = [0, 0], sizes = [8, 32], strides = [1, 1]} : vector<8x64xf32> to vector<8x32xf32>
    %21 = vector.extract_strided_slice %19 {offsets = [0, 32], sizes = [8, 32], strides = [1, 1]} : vector<8x64xf32> to vector<8x32xf32>
    %22 = vector.extract_strided_slice %11 {offsets = [0, 64], sizes = [8, 32], strides = [1, 1]} : vector<8x128xf32> to vector<8x32xf32>
    %23 = math.tanh %22 : vector<8x32xf32>
    %24 = arith.mulf %21, %2 : vector<8x32xf32>
    %25 = arith.mulf %20, %23 : vector<8x32xf32>
    %26 = arith.addf %24, %25 : vector<8x32xf32>
    %27 = vector.extract_strided_slice %13 {offsets = [0, 0], sizes = [8, 32], strides = [1, 1]} : vector<8x128xf32> to vector<8x32xf32>
    %28 = vector.extract_strided_slice %13 {offsets = [0, 32], sizes = [8, 32], strides = [1, 1]} : vector<8x128xf32> to vector<8x32xf32>
    %29 = vector.extract_strided_slice %13 {offsets = [0, 64], sizes = [8, 32], strides = [1, 1]} : vector<8x128xf32> to vector<8x32xf32>
    %30 = vector.extract_strided_slice %13 {offsets = [0, 96], sizes = [8, 32], strides = [1, 1]} : vector<8x128xf32> to vector<8x32xf32>
    %cst_17 = arith.constant 1.000000e+00 : f32
    %31 = vector.broadcast %cst_17 : f32 to vector<8x32xf32>
    %32 = arith.subf %31, %20 : vector<8x32xf32>
    %33 = arith.mulf %20, %32 : vector<8x32xf32>
    %34 = arith.mulf %33, %27 : vector<8x32xf32>
    %cst_18 = arith.constant 1.000000e+00 : f32
    %35 = vector.broadcast %cst_18 : f32 to vector<8x32xf32>
    %36 = arith.subf %35, %21 : vector<8x32xf32>
    %37 = arith.mulf %21, %36 : vector<8x32xf32>
    %38 = arith.mulf %37, %28 : vector<8x32xf32>
    %39 = arith.mulf %23, %23 : vector<8x32xf32>
    %cst_19 = arith.constant 1.000000e+00 : f32
    %40 = vector.broadcast %cst_19 : f32 to vector<8x32xf32>
    %41 = arith.subf %40, %39 : vector<8x32xf32>
    %42 = arith.mulf %41, %29 : vector<8x32xf32>
    %43 = arith.mulf %38, %2 : vector<8x32xf32>
    %44 = arith.mulf %34, %23 : vector<8x32xf32>
    %45 = arith.addf %43, %44 : vector<8x32xf32>
    %46 = arith.mulf %20, %42 : vector<8x32xf32>
    %47 = arith.addf %45, %46 : vector<8x32xf32>
    %cst_20 = arith.constant dense<0.000000e+00> : vector<8x32xf32>
    %48 = tpu.matmul %26, %5, %cst_20 {dimension_numbers = #tpu.dot_dimension_numbers<[1], [0], [0], [1], [0, 0, 1, 1], [], []>} : vector<8x32xf32>, vector<32x32xf32>, vector<8x32xf32> -> vector<8x32xf32>
    %cst_21 = arith.constant dense<0.000000e+00> : vector<8x32xf32>
    %49 = tpu.matmul %47, %5, %cst_21 {dimension_numbers = #tpu.dot_dimension_numbers<[1], [0], [0], [1], [0, 0, 1, 1], [], []>} : vector<8x32xf32>, vector<32x32xf32>, vector<8x32xf32> -> vector<8x32xf32>
    %50 = vector.extract_strided_slice %11 {offsets = [0, 96], sizes = [8, 32], strides = [1, 1]} : vector<8x128xf32> to vector<8x32xf32>
    %51 = arith.addf %50, %48 : vector<8x32xf32>
    %52 = vector.broadcast %7 : vector<1x32xf32> to vector<8x32xf32>
    %53 = arith.addf %51, %52 : vector<8x32xf32>
    %54 = arith.negf %53 : vector<8x32xf32>
    %55 = math.exp %54 : vector<8x32xf32>
    %cst_22 = arith.constant 1.000000e+00 : f32
    %56 = vector.broadcast %cst_22 : f32 to vector<8x32xf32>
    %57 = arith.addf %56, %55 : vector<8x32xf32>
    %58 = arith.divf %56, %57 : vector<8x32xf32>
    %cst_23 = arith.constant 1.000000e+00 : f32
    %59 = vector.broadcast %cst_23 : f32 to vector<8x32xf32>
    %60 = arith.subf %59, %58 : vector<8x32xf32>
    %61 = arith.mulf %58, %60 : vector<8x32xf32>
    %62 = arith.addf %30, %49 : vector<8x32xf32>
    %63 = arith.mulf %61, %62 : vector<8x32xf32>
    %64 = math.tanh %26 : vector<8x32xf32>
    %65 = arith.mulf %63, %64 : vector<8x32xf32>
    %66 = arith.mulf %64, %64 : vector<8x32xf32>
    %cst_24 = arith.constant 1.000000e+00 : f32
    %67 = vector.broadcast %cst_24 : f32 to vector<8x32xf32>
    %68 = arith.subf %67, %66 : vector<8x32xf32>
    %69 = arith.mulf %58, %68 : vector<8x32xf32>
    %70 = arith.mulf %69, %47 : vector<8x32xf32>
    %71 = arith.addf %65, %70 : vector<8x32xf32>
    %72 = arith.mulf %58, %64 : vector<8x32xf32>
    %73 = tpu.concatenate %71, %47, %72, %26 in 1 : vector<8x32xf32>, vector<8x32xf32>, vector<8x32xf32>, vector<8x32xf32> -> vector<8x128xf32>
    %c0_25 = arith.constant 0 : index
    %c0_26 = arith.constant 0 : index
    %74 = vector.load %arg8[%c0_25, %c0_26] : memref<8x128xf32, #tpu.memory_space<vmem>>, vector<8x128xf32>
    tpu.vector_store %arg8[%c0_25, %c0_26], %73 {strides = array<i32>} : memref<8x128xf32, #tpu.memory_space<vmem>>, vector<8x128xf32>,
    return
  }
}

</mosaic_0001>

<bundles_post_ra>
// kernel: tpu_custom_call.1
= control target key start
LH: loop header
LB: loop body
LE: loop exit
PB: predicated region body
PF: predicated region fallthrough
CT: control target
= control target key end

     0   :  { %13 = vsyncpa [#allocation3], 0  ;;  %s1040_s0 = inlined_call_operand.hbm [shape: f32[8,16], index: 0, kind: input, shape index: {}]   ;;  %s1041_s1 = inlined_call_operand.hbm [shape: f32[8,32], index: 1, kind: input, shape index: {}]   ;;  %s1042_s2 = inlined_call_operand.hbm [shape: f32[8,32], index: 2, kind: input, shape index: {}]   ;;  %s1043_s3 = inlined_call_operand.vmem [shape: f32[8,16], index: 3, kind: input, shape index: {}]   ;;  %s1044_s4 = inlined_call_operand.hbm [shape: f32[80,128], index: 4, kind: input, shape index: {}]   ;;  %s1045_s5 = inlined_call_operand.hbm [shape: f32[32,32], index: 5, kind: input, shape index: {}]   ;;  %s1046_s6 = inlined_call_operand.vmem [shape: f32[1,128], index: 6, kind: input, shape index: {}]   ;;  %s1047_s7 = inlined_call_operand.vmem [shape: f32[1,32], index: 7, kind: input, shape index: {}]   ;;  %s1048_s8 = inlined_call_operand.hbm [shape: f32[8,128], index: 8, kind: output, shape index: {}]  }
   0x1   :  { %14 = vsyncpa [#allocation6], 0 }
   0x2   :  { %15 = vsyncpa [#allocation9], 0 }
   0x3   :  { %16 = vsyncpa [#allocation4], 0  ;;  %s835_s27 = smov [#allocation5]   ;;  %s836_s29 = smov [#allocation8]  }
   0x4   :  { %s33_s28 = sshll.u32 %s835_s27, 4  ;;  %s54_s30 = sshll.u32 %s836_s29, 4  ;;  %s34_s28 = int_to_ptr.vmem [resolvable:$true] %s33_s28  ;;  %s896_s30 = int_to_ptr.vmem [resolvable:$true] %s54_s30 }
   0x5   :  { %s695_s11 = scalar_lea.hbm %s1041_s1, 128 }
   0x6   :  { %p696_p0 = scmp.ne.s32.totalorder %s1041_s1, %s695_s11  ;;  %p699_p1 = scmp.lt.u32.totalorder %s695_s11, %s1041_s1 }
   0x8   :  { %p701_p2 = pnand %p699_p1, %p696_p0 }
   0xa   :  { %704 = shalt.err (!%p701_p2)
}
   0xb   :  { %s705_s16 = scalar_lea.vmem %s34_s28, 128  ;;  %p710_p4 = scmp.lt.s32.totalorder %s34_s28, %s34_s28 }
   0xc   :  { %p706_p3 = scmp.ne.s32.totalorder %s34_s28, %s705_s16  ;;  %p711_p5 = scmp.lt.s32.totalorder %s705_s16, %s705_s16 }
   0xe   :  { %p712_p6 = por %p711_p5, %p710_p4 }
  0x10   :  { %p713_p7 = pnand %p712_p6, %p706_p3 }
  0x12   :  { %716 = shalt.err (!%p713_p7)
}
  0x13   :  { %36 = dma.hbm_to_vmem [thread:$0]  %s1041_s1, 128, %s34_s28, [#allocation6]  }
  0x14   :  { %s717_s21 = scalar_lea.hbm %s1044_s4, 1280 }
  0x15   :  { %p718_p8 = scmp.ne.s32.totalorder %s1044_s4, %s717_s21  ;;  %p721_p9 = scmp.lt.u32.totalorder %s717_s21, %s1044_s4 }
  0x17   :  { %p723_p10 = pnand %p721_p9, %p718_p8 }
  0x19   :  { %726 = shalt.err (!%p723_p10)
}
  0x1a   :  { %s727_s26 = scalar_lea.vmem %s896_s30, 1280  ;;  %p732_p12 = scmp.lt.s32.totalorder %s896_s30, %s896_s30 }
  0x1b   :  { %p728_p11 = scmp.ne.s32.totalorder %s896_s30, %s727_s26  ;;  %p733_p13 = scmp.lt.s32.totalorder %s727_s26, %s727_s26 }
  0x1d   :  { %p734_p0 = por %p733_p13, %p732_p12 }
  0x1f   :  { %p735_p1 = pnand %p734_p0, %p728_p11 }
  0x21   :  { %738 = shalt.err (!%p735_p1)
}
  0x22   :  { %s837_s1 = smov 128   ;;  %s838_s27 = smov 8  }
  0x23   :  { %60 = dma.hbm_to_vmem [thread:$0]  %s1044_s4, 1280, %s896_s30, [#allocation9], %s837_s1, %s837_s1, %s838_s27  }
  0x24   :  { %s839_s9 = smov [#allocation2]   ;;  %s840_s11 = smov [#allocation7]  }
  0x25   :  { %s23_s10 = sshll.u32 %s839_s9, 4  ;;  %s43_s12 = sshll.u32 %s840_s11, 4  ;;  %s24_s10 = int_to_ptr.vmem [resolvable:$true] %s23_s10  ;;  %s44_s12 = int_to_ptr.vmem [resolvable:$true] %s43_s12 }
  0x26   :  { %s739_s15 = scalar_lea.hbm %s1040_s0, 128 }
  0x27   :  { %p740_p2 = scmp.ne.s32.totalorder %s1040_s0, %s739_s15  ;;  %p743_p3 = scmp.lt.u32.totalorder %s739_s15, %s1040_s0 }
  0x29   :  { %p745_p4 = pnand %p743_p3, %p740_p2 }
  0x2b   :  { %748 = shalt.err (!%p745_p4)
}
  0x2c   :  { %s749_s4 = scalar_lea.vmem %s24_s10, 128  ;;  %p754_p6 = scmp.lt.s32.totalorder %s24_s10, %s24_s10 }
  0x2d   :  { %p750_p5 = scmp.ne.s32.totalorder %s24_s10, %s749_s4  ;;  %p755_p7 = scmp.lt.s32.totalorder %s749_s4, %s749_s4 }
  0x2f   :  { %p756_p8 = por %p755_p7, %p754_p6 }
  0x31   :  { %p757_p9 = pnand %p756_p8, %p750_p5 }
  0x33   :  { %760 = shalt.err (!%p757_p9)
}
  0x34   :  { %26 = dma.hbm_to_vmem [thread:$0]  %s1040_s0, 128, %s24_s10, [#allocation3]  }
  0x35   :  { %s761_s23 = scalar_lea.hbm %s1042_s2, 128 }
  0x36   :  { %p762_p10 = scmp.ne.s32.totalorder %s1042_s2, %s761_s23  ;;  %p765_p11 = scmp.lt.u32.totalorder %s761_s23, %s1042_s2 }
  0x38   :  { %p767_p12 = pnand %p765_p11, %p762_p10 }
  0x3a   :  { %770 = shalt.err (!%p767_p12)
}
  0x3b   :  { %s771_s29 = scalar_lea.vmem %s44_s12, 128  ;;  %p776_p0 = scmp.lt.s32.totalorder %s44_s12, %s44_s12 }
  0x3c   :  { %p772_p13 = scmp.ne.s32.totalorder %s44_s12, %s771_s29  ;;  %p777_p1 = scmp.lt.s32.totalorder %s771_s29, %s771_s29 }
  0x3e   :  { %p778_p2 = por %p777_p1, %p776_p0 }
  0x40   :  { %p779_p3 = pnand %p778_p2, %p772_p13 }
  0x42   :  { %782 = shalt.err (!%p779_p3)
}
  0x43   :  { %46 = dma.hbm_to_vmem [thread:$0]  %s1042_s2, 128, %s44_s12, [#allocation6]  }
  0x44   :  { %s841_s10 = smov [#allocation10]   ;;  %s783_s15 = scalar_lea.hbm %s1045_s5, 512 }
  0x45   :  { %s66_s11 = sshll.u32 %s841_s10, 4  ;;  %p784_p4 = scmp.ne.s32.totalorder %s1045_s5, %s783_s15  ;;  %s67_s11 = int_to_ptr.vmem [resolvable:$true] %s66_s11 }
  0x46   :  { %p787_p5 = scmp.lt.u32.totalorder %s783_s15, %s1045_s5 }
  0x48   :  { %p789_p6 = pnand %p787_p5, %p784_p4 }
  0x4a   :  { %792 = shalt.err (!%p789_p6)
}
  0x4b   :  { %s793_s4 = scalar_lea.vmem %s67_s11, 512  ;;  %p798_p8 = scmp.lt.s32.totalorder %s67_s11, %s67_s11 }
  0x4c   :  { %p794_p7 = scmp.ne.s32.totalorder %s67_s11, %s793_s4  ;;  %p799_p9 = scmp.lt.s32.totalorder %s793_s4, %s793_s4 }
  0x4e   :  { %p800_p10 = por %p799_p9, %p798_p8 }
  0x50   :  { %p801_p11 = pnand %p800_p10, %p794_p7 }
  0x52   :  { %804 = shalt.err (!%p801_p11)
}
  0x53   :  { %72 = dma.hbm_to_vmem [thread:$0]  %s1045_s5, 512, %s67_s11, [#allocation9], %s837_s1, %s837_s1, %s838_s27  }
  0x54   :  { %827 = dma.done.wait [#allocation3], 128  }
  0x55   :  { %828 = vsyncadd [#allocation3], 4294967168 }
  0x56   :  { %829 = dma.done.wait [#allocation6], 256  }
  0x57   :  { %830 = vsyncadd [#allocation6], 4294967040 }
  0x58   :  { %831 = dma.done.wait [#allocation9], 1792  }
  0x59   :  { %832 = vsyncadd [#allocation9], 4294965504  ;;  %v842_v0 = vmov 0.0|0.0   ;;  %vm843_vm0 = vmmov 0   ;;  %v844_v1 = vmov 0.0   ;;  %v93_v2 = vld [vmem:[#allocation5] sm:$0xff] }
  0x5a   :  { %637 = vmatprep.subr.bf16.mxu0 %v842_v0  ;;  %652 = vmatprep.subr.bf16.mxu1 %v842_v0  ;;  %v96_v3 = vld [vmem:[#allocation8] sm:$0xff]  ;;  %s845_s5 = smov 16   ;;  %v97_v4 = vld [vmem:[#allocation8 + $0x8] sm:$0xff]  ;;  %v98_v5 = vld [vmem:[#allocation8 + $0x10] sm:$0xff]  ;;  %s846_s30 = smov 48   ;;  %vm120_vm1 = vcmask 130048  }
  0x5b   :  { %605 = vmatprep.mubr.msk.f32.mxu0 %vm843_vm0, %v844_v1  ;;  %612 = vmatprep.mubr.msk.f32.mxu1 %vm843_vm0, %v844_v1  ;;  %v99_v6 = vld [vmem:[#allocation8 + $0x18] sm:$0xff]  ;;  %v638_v8 = vpack.c.bf16 %v97_v4, %v96_v3  ;;  %v95_v10 = vld [vmem:[%s1043_s3] sm:$0xff]  ;;  %v100_v11 = vld [vmem:[#allocation8 + $0x20] sm:$0xff]  ;;  %s847_s3 = smov 32   ;;  %vm122_vm2 = vcmask 392192   ;;  %vm130_vm3 = vcmask 654336  }
  0x5c   :  { %113 = vrot.lane.b32.xlu0 %v93_v2, %s845_s5  ;;  %v94_v7 = vld [vmem:[#allocation7] sm:$0xff]  ;;  %v641_v9 = vpack.c.bf16 %v99_v6, %v98_v5  ;;  %v101_v12 = vld [vmem:[#allocation8 + $0x28] sm:$0xff]  ;;  %v102_v14 = vld [vmem:[#allocation8 + $0x30] sm:$0xff]  ;;  %s848_s22 = smov 64   ;;  %vm324_vm4 = vcmask 261120   ;;  %vm531_vm5 = vcmask 523264  }
  0x5d   :  { %639 = vmatpush3.bf16.msra.mxu0 %v638_v8  ;;  %654 = vmatpush3.bf16.msra.mxu1 %v638_v8  ;;  %v644_v13 = vpack.c.bf16 %v101_v12, %v100_v11  ;;  %v103_v15 = vld [vmem:[#allocation8 + $0x38] sm:$0xff]  ;;  %v104_v17 = vld [vmem:[#allocation8 + $0x40] sm:$0xff]  ;;  %v105_v18 = vld [vmem:[#allocation8 + $0x48] sm:$0xff]  ;;  %vm533_vm6 = vcmask 785408  }
  0x5e   :  { %640 = vmatprep.subr.bf16.mxu0 %v842_v0  ;;  %655 = vmatprep.subr.bf16.mxu1 %v842_v0  ;;  %v647_v16 = vpack.c.bf16 %v103_v15, %v102_v14  ;;  %v650_v19 = vpack.c.bf16 %v105_v18, %v104_v17  ;;  %v92_v21 = vld [vmem:[#allocation2] sm:$0xff]  ;;  %v106_v47 = vld [vmem:[#allocation10] sm:$0xff]  ;;  %v107_v48 = vld [vmem:[#allocation10 + $0x8] sm:$0xff] }
  0x5f   :  { %v553_v27 = vld [vmem:[%s1046_s6] ss:$0 sm:$0xff]  ;;  %v108_v49 = vld [vmem:[#allocation10 + $0x10] sm:$0xff]  ;;  %v656_v50 = vpack.c.bf16 %v107_v48, %v106_v47  ;;  %s849_s6 = smov 96  }
  0x60   :  { %117 = vrot.lane.b32.xlu0 %v94_v7, %s846_s30  ;;  %613 = vmatmul.mubr.msk.f32.vlgmr.msra.gmra.mrb[0].mxu1 %vm120_vm1, %v95_v10  ;;  %v109_v51 = vld [vmem:[#allocation10 + $0x18] sm:$0xff] }
  0x61   :  { %642 = vmatpush3.bf16.msra.mxu0 %v641_v9  ;;  %623 = vmatprep.mubr.msk.f32.mxu1 %vm843_vm0, %v844_v1  ;;  %v659_v52 = vpack.c.bf16 %v109_v51, %v108_v49  ;;  %v559_v62 = vld [vmem:[%s1047_s7] ss:$0 sm:$0xff]  ;;  %s850_s7 = smov [#allocation11]  }
  0x62   :  { %643 = vmatprep.subr.bf16.mxu0 %v842_v0  ;;  %657 = vmatpush3.bf16.msra.mxu1 %v656_v50  ;;  %s542_s25 = sshll.u32 %s850_s7, 4  ;;  %s543_s25 = int_to_ptr.vmem [resolvable:$true] %s542_s25 }
  0x63   :  { %658 = vmatprep.subr.bf16.mxu1 %v842_v0  ;;  %s805_s26 = scalar_lea.vmem %s543_s25, 128  ;;  %p810_p13 = scmp.lt.s32.totalorder %s543_s25, %s543_s25 }
  0x64   :  { %284 = vrot.lane.b32.xlu0 %v94_v7, %s847_s3  ;;  %p806_p12 = scmp.ne.s32.totalorder %s543_s25, %s805_s26  ;;  %p811_p0 = scmp.lt.s32.totalorder %s805_s26, %s805_s26 }
  0x65   :  { %645 = vmatpush3.bf16.msra.mxu0 %v644_v13 }
  0x66   :  { %646 = vmatprep.subr.bf16.mxu0 %v842_v0  ;;  %660 = vmatpush3.bf16.msra.mxu1 %v659_v52  ;;  %p812_p1 = por %p811_p0, %p810_p13 }
  0x67   :  { %661 = vmatprep.subr.bf16.mxu1 %v842_v0 }
  0x68   :  { %p813_p2 = pnand %p812_p1, %p806_p12 }
  0x69   :  { %648 = vmatpush3.bf16.msra.mxu0 %v647_v16 }
  0x6a   :  { %649 = vmatprep.subr.bf16.mxu0 %v842_v0 }
  0x6d   :  { %651 = vmatpush3.bf16.msra.mxu0 %v650_v19 }
  0xce   :  { %v114_v20 = vpop.permute.xlu0 %113 }
  0xcf   :  { %v121_v22 = vsel %vm120_vm1, %v92_v21, %v114_v20 }
  0xd2   :  { %v118_v23 = vpop.permute.xlu0 %117 }
  0xd3   :  { %v123_v24 = vsel %vm122_vm2, %v121_v22, %v118_v23 }
  0xd4   :  { %606 = vmatmul.mubr.msk.f32.vlgmr.msra.gmra.mrb[0].mxu0 %vm130_vm3, %v123_v24 }
  0xd6   :  { %v285_v53 = vpop.permute.xlu0 %284 }
 0x133   :  { %v988_v25 = vpop.f32.mrb[0].mxu1 }
 0x134   :  { %v614_v26 = vpop.f32.mrb[1].mxu1 }
 0x1a7   :  { %v200_v28 = vpop.f32.mrb[0].mxu0 }
 0x1a8   :  { %v993_v29 = vadd.f32 %v553_v27, %v200_v28  ;;  %v607_v30 = vpop.f32.mrb[1].mxu0 }
 0x1aa   :  { %683 = vtanh.f32 %v993_v29  ;;  %v556_v35 = vmul.f32 -1.442695, %v993_v29 }
 0x1ac   :  { %685 = vpow2.f32 %v556_v35 }
 0x1b4   :  { %v684_v31 = vpop.eup %683 }
 0x1b5   :  { %289 = vrot.lane.b32.xlu1 %v684_v31, %s848_s22  ;;  %v301_v32 = vmul.f32 %v684_v31, %v684_v31 }
 0x1b6   :  { %v686_v36 = vpop.eup %685 }
 0x1b7   :  { %v302_v33 = vsub.f32 1.0, %v301_v32  ;;  %v280_v37 = vadd.f32 1.0, %v686_v36 }
 0x1b9   :  { %v303_v34 = vmul.f32 %v302_v33, %v988_v25  ;;  %687 = vrcp.f32 %v280_v37 }
 0x1bb   :  { %312 = vrot.lane.b32.xlu1 %v303_v34, %s848_s22 }
 0x1c3   :  { %v688_v38 = vpop.eup %687 }
 0x1c4   :  { %v298_v39 = vsub.f32 1.0, %v688_v38  ;;  %v287_v54 = vmul.f32 %v688_v38, %v285_v53 }
 0x1c6   :  { %v299_v40 = vmul.f32 %v688_v38, %v298_v39 }
 0x1c8   :  { %v300_v41 = vmul.f32 %v299_v40, %v988_v25 }
 0x1ca   :  { %v304_v58 = vmul.f32 %v300_v41, %v285_v53 }
 0x227   :  { %v290_v42 = vpop.permute.xlu1 %289 }
 0x228   :  { %v292_v43 = vmul.f32 %v688_v38, %v290_v42  ;;  %v305_v44 = vmul.f32 %v300_v41, %v290_v42 }
 0x22a   :  { %307 = vrot.lane.b32.xlu0 %v305_v44, %s847_s3  ;;  %294 = vrot.lane.b32.xlu1 %v292_v43, %s847_s3 }
 0x22d   :  { %v313_v45 = vpop.permute.xlu1 %312 }
 0x22e   :  { %v315_v46 = vmul.f32 %v688_v38, %v313_v45 }
 0x230   :  { %317 = vrot.lane.b32.xlu1 %v315_v46, %s847_s3 }
 0x29c   :  { %v295_v55 = vpop.permute.xlu1 %294  ;;  %v308_v57 = vpop.permute.xlu0 %307 }
 0x29d   :  { %v297_v56 = vadd.f32 %v295_v55, %v287_v54  ;;  %v310_v59 = vadd.f32 %v308_v57, %v304_v58 }
 0x29f   :  { %689 = vtanh.f32 %v297_v56  ;;  %322 = vrot.lane.b32.xlu0 %v297_v56, %s849_s6 }
 0x2a2   :  { %v318_v60 = vpop.permute.xlu1 %317 }
 0x2a3   :  { %v320_v61 = vadd.f32 %v318_v60, %v310_v59 }
 0x2a5   :  { %398 = vrot.lane.b32.xlu1 %v320_v61, %s849_s6 }
 0x2a9   :  { %v690_v63 = vpop.eup %689  ;;  %482 = vrot.lane.b32.xlu1 %v559_v62, %s849_s6 }
 0x2aa   :  { %v506_v2 = vmul.f32 %v690_v63, %v690_v63 }
 0x2ac   :  { %v507_v3 = vsub.f32 1.0, %v506_v2 }
 0x2ae   :  { %509 = vrot.lane.b32.xlu1 %v507_v3, %s848_s22 }
 0x2b2   :  { %513 = vrot.lane.b32.xlu1 %v320_v61, %s848_s22 }
 0x311   :  { %v323_v4 = vpop.permute.xlu0 %322 }
 0x312   :  { %624 = vmatmul.mubr.msk.f32.vlgmr.msra.gmra.mrb[2].mxu1 %vm324_vm4, %v323_v4 }
 0x313   :  { %663 = vmatpush3.bf16.msra.mxu1 %v656_v50  ;;  %634 = vmatprep.mubr.msk.f32.mxu1 %vm843_vm0, %v844_v1 }
 0x314   :  { %664 = vmatprep.subr.bf16.mxu1 %v842_v0 }
 0x317   :  { %666 = vmatpush3.bf16.msra.mxu1 %v659_v52  ;;  %v399_v5 = vpop.permute.xlu1 %398 }
 0x31a   :  { %635 = vmatmul.mubr.msk.f32.vlgmr.msra.gmra.mrb[4].mxu1 %vm324_vm4, %v399_v5 }
 0x31b   :  { %v483_v1 = vpop.permute.xlu1 %482 }
 0x320   :  { %v510_v17 = vpop.permute.xlu1 %509 }
 0x324   :  { %v514_v26 = vpop.permute.xlu1 %513 }
 0x3e5   :  { %v393_v6 = vpop.f32.mrb[2].mxu1 }
 0x3e6   :  { %473 = vrot.lane.b32.xlu0 %v393_v6, %s849_s6  ;;  %v625_v7 = vpop.f32.mrb[3].mxu1 }
 0x3ed   :  { %v468_v8 = vpop.f32.mrb[4].mxu1 }
 0x3ee   :  { %495 = vrot.lane.b32.xlu0 %v468_v8, %s849_s6  ;;  %v636_v9 = vpop.f32.mrb[5].mxu1 }
 0x3f2   :  { %502 = vrot.lane.b32.xlu0 %v690_v63, %s848_s22 }
 0x458   :  { %v474_v10 = vpop.permute.xlu0 %473 }
 0x459   :  { %v476_v11 = vadd.f32 %v474_v10, %v993_v29 }
 0x45b   :  { %v485_v12 = vadd.f32 %v483_v1, %v476_v11 }
 0x45d   :  { %v560_v0 = vmul.f32 -1.442695, %v485_v12 }
 0x45f   :  { %691 = vpow2.f32 %v560_v0 }
 0x460   :  { %v496_v15 = vpop.permute.xlu0 %495 }
 0x461   :  { %v498_v22 = vadd.f32 %v496_v15, %v988_v25 }
 0x464   :  { %v503_v18 = vpop.permute.xlu0 %502 }
 0x469   :  { %v692_v13 = vpop.eup %691 }
 0x46a   :  { %v489_v14 = vadd.f32 1.0, %v692_v13 }
 0x46c   :  { %693 = vrcp.f32 %v489_v14 }
 0x476   :  { %v694_v16 = vpop.eup %693 }
 0x477   :  { %v492_v19 = vsub.f32 1.0, %v694_v16  ;;  %v518_v20 = vmul.f32 %v694_v16, %v503_v18  ;;  %v512_v23 = vmul.f32 %v694_v16, %v510_v17 }
 0x479   :  { %v493_v21 = vmul.f32 %v694_v16, %v492_v19  ;;  %524 = vrot.lane.b32.xlu1 %v518_v20, %s849_s6  ;;  %v516_v28 = vmul.f32 %v514_v26, %v512_v23 }
 0x47b   :  { %v499_v24 = vmul.f32 %v498_v22, %v493_v21 }
 0x47d   :  { %v505_v27 = vmul.f32 %v503_v18, %v499_v24 }
 0x47f   :  { %v517_v29 = vadd.f32 %v516_v28, %v505_v27 }
 0x481   :  { %520 = vrot.lane.b32.xlu0 %v517_v29, %s847_s3 }
 0x485   :  { %527 = vrot.lane.b32.xlu0 %v297_v56, %s848_s22 }
 0x4eb   :  { %v525_v25 = vpop.permute.xlu1 %524 }
 0x4f3   :  { %v521_v30 = vpop.permute.xlu0 %520 }
 0x4f4   :  { %v530_v31 = vsel %vm324_vm4, %v521_v30, %v320_v61 }
 0x4f5   :  { %v532_v33 = vsel %vm531_vm5, %v530_v31, %v525_v25 }
 0x4f7   :  { %v528_v32 = vpop.permute.xlu0 %527 }
 0x4f8   :  { %v534_v34 = vsel %vm533_vm6, %v532_v33, %v528_v32 }
 0x4f9   :  { %535 = vst [vmem:[#allocation11] sm:$0xff] %v534_v34 }
 0x4fa   :  { %816 = shalt.err (!%p813_p2)
}
 0x4fb   :  { %s817_s0 = scalar_lea.hbm %s1048_s8, 128 }
 0x4fc   :  { %p818_p3 = scmp.ne.s32.totalorder %s1048_s8, %s817_s0  ;;  %p821_p4 = scmp.lt.u32.totalorder %s817_s0, %s1048_s8 }
 0x4fe   :  { %p823_p5 = pnand %p821_p4, %p818_p3 }
 0x500   :  { %826 = shalt.err (!%p823_p5)
}
 0x501   :  { %545 = dma.vmem_to_hbm [thread:$0]  %s543_s25, 128, %s1048_s8, [#allocation4]  }
 0x502   :  { %833 = dma.done.wait [#allocation4], 128  }
 0x503   :  { %834 = vsyncadd [#allocation4], 4294967168 }
 0x504   :  { %549 = vsyncpa [#allocation3], 1 }
 0x505   :  { %550 = vsyncpa [#allocation6], 1 }
 0x506   :  { %551 = vsyncpa [#allocation9], 1 }
 0x507   :  { %552 = vsyncpa [#allocation4], 1 }

</bundles_post_ra>
